<compile_context>
chip_gen: v5e
topology: v5e:2x2
jax: 0.10.0
libtpu: 0.0.40
codegen_flags: <defaults>
</compile_context>

<pallas_src>
from functools import partial

import jax
import jax.numpy as jnp
from jax import lax
from jax.experimental import pallas as pl
from jax.experimental.pallas import tpu as pltpu


def _normalize_f32(x):
    """F.normalize(p=2, dim=1): x * rsqrt(max(||x||^2, eps^2)), eps=1e-12."""
    x = x.astype(jnp.float32)
    ssq = jnp.sum(x * x, axis=1, keepdims=True)
    return x * lax.rsqrt(jnp.maximum(ssq, jnp.float32(1e-24)))


def _infonce_kernel(zn1_ref, zn2_ref, zcat_ref, lab_ref,
                    loss1_ref, loss2_ref,
                    lhs1_sc, lhs2_sc, den1_sc, den2_sc,
                    diag1_sc, diag2_sc, pos_sc,
                    *, inv_t):
    j = pl.program_id(1)
    nj = pl.num_programs(1)
    mm_dtype = lhs1_sc.dtype

    @pl.when(j == 0)
    def _prologue():
        # Row tiles arrive pre-normalized f32 and are VMEM-resident across the
        # column sweep; do the per-row-tile work exactly once.
        z1 = zn1_ref[...]                                   # [tm, Dp]
        z2 = zn2_ref[...]                                   # [tm, Dp]
        # Fold 1/T into the MXU LHS (exact when 1/T is a power of two, e.g. T=0.5).
        a1 = (z1 * inv_t).astype(mm_dtype)
        a2 = (z2 * inv_t).astype(mm_dtype)
        lhs1_sc[...] = a1
        lhs2_sc[...] = a2
        # Diagonal term from the same MXU-dtype operands the denominator sees
        # (matches bf16 operand rounding; subtraction is then consistent).
        b1 = z1.astype(mm_dtype).astype(jnp.float32)
        b2 = z2.astype(mm_dtype).astype(jnp.float32)
        diag1_sc[...] = jnp.sum(a1.astype(jnp.float32) * b1, axis=1, keepdims=True)
        diag2_sc[...] = jnp.sum(a2.astype(jnp.float32) * b2, axis=1, keepdims=True)
        # Positives: sim_ij == sim_ji == rowsum(z_i * z_j), exact f32, labels applied.
        pos_sc[...] = jnp.sum(z1 * z2, axis=1, keepdims=True) * lab_ref[...]
        den1_sc[...] = jnp.zeros_like(den1_sc)
        den2_sc[...] = jnp.zeros_like(den2_sc)

    # One column tile of the pre-normalized concat([z_i, z_j]) stream (mm_dtype).
    cols = zcat_ref[...]                                    # [tc, Dp]
    dn = (((1,), (1,)), ((), ()))                            # contract on embedding axis
    s1 = lax.dot_general(lhs1_sc[...], cols, dn, preferred_element_type=jnp.float32)
    s2 = lax.dot_general(lhs2_sc[...], cols, dn, preferred_element_type=jnp.float32)
    den1_sc[...] += jnp.sum(jnp.exp(s1), axis=1, keepdims=True)
    den2_sc[...] += jnp.sum(jnp.exp(s2), axis=1, keepdims=True)

    @pl.when(j == nj - 1)
    def _epilogue():
        p = pos_sc[...] * inv_t
        d1 = den1_sc[...] - jnp.exp(diag1_sc[...])
        d2 = den2_sc[...] - jnp.exp(diag2_sc[...])
        # -log(exp(pos/T) / denom) == log(denom) - pos/T
        loss1_ref[...] = jnp.log(d1) - p
        loss2_ref[...] = jnp.log(d2) - p


def _pick_tile(n, target):
    """Largest multiple-of-8 divisor of n that is <= target, else n (full dim)."""
    if n <= target:
        return n
    t = (target // 8) * 8
    while t >= 8:
        if n % t == 0:
            return t
        t -= 8
    return n


def info_nce_loss(proj_1, proj_2, labels=None, temperature=0.5,
                  use_bf16=True, row_tile=None, col_tile=None):
    """proj_1, proj_2: [B, D]; labels: [B] (or [B,1]); returns scalar f32 loss."""
    B, D = proj_1.shape
    assert proj_2.shape == (B, D), "batch sizes / dims of proj_1 and proj_2 must match"
    if labels is None:
        labels = jnp.ones((B,), dtype=jnp.float32)
    labels2d = jnp.reshape(labels, (B, 1)).astype(jnp.float32)

    # Zero-pad the embedding dim to a lane-dense multiple of 128 (exact: zero
    # columns change neither norms nor dot products).
    Dp = max(128, ((D + 127) // 128) * 128)
    p1 = proj_1.astype(jnp.float32)
    p2 = proj_2.astype(jnp.float32)
    if Dp != D:
        pad = ((0, 0), (0, Dp - D))
        p1 = jnp.pad(p1, pad)
        p2 = jnp.pad(p2, pad)

    # Normalize ONCE outside the grid; stream columns in the MXU dtype.
    zn1 = _normalize_f32(p1)                                 # [B, Dp] f32
    zn2 = _normalize_f32(p2)                                 # [B, Dp] f32
    mm_dtype = jnp.bfloat16 if use_bf16 else jnp.float32
    zcat = jnp.concatenate([zn1, zn2], axis=0).astype(mm_dtype)   # [2B, Dp]

    # Tile heuristics: bigger tiles at small Dp to amortize ~0.35us/step overhead.
    if Dp <= 512:
        target = 512
    elif Dp <= 2048:
        target = 256
    else:
        target = 128
    auto_row = row_tile is None
    row_tile = target if row_tile is None else row_tile
    col_tile = target if col_tile is None else col_tile
    tm = _pick_tile(B, row_tile)
    if auto_row and B // tm < 2 and B >= 16:
        # >= 2 row blocks so the "parallel" axis can shard across v7x's two TCs.
        tm = _pick_tile(B, max(8, tm // 2))
    tc = _pick_tile(2 * B, col_tile)

    # Generation-aware VMEM budgeting (v7x has only 64 MiB physical VMEM).
    mm_size = jnp.dtype(mm_dtype).itemsize
    try:
        phys_vmem = int(pltpu.get_tpu_info().vmem_capacity_bytes)
    except Exception:
        phys_vmem = 64 * 1024 * 1024            # conservative (v7x) fallback

    def _est(tm_, tc_):
        return (2 * 2 * tm_ * Dp * 4            # two f32 row tiles, double buffered
                + 2 * tc_ * Dp * mm_size        # column tile, double buffered
                + 2 * tm_ * Dp * mm_size        # cached LHS scratches
                + 4 * tm_ * tc_ * 4             # two (tm, tc) f32 S blocks + exp temps
                + 64 * tm_)                     # (tm,1) scratches / labels / outputs

    budget = int(phys_vmem * 0.45)
    for _ in range(8):
        if _est(tm, tc) <= budget:
            break
        if tc >= tm and tc > 8:
            new_tc = _pick_tile(2 * B, max(8, tc // 2))
            if new_tc < tc:
                tc = new_tc
                continue
        if tm > 8:
            new_tm = _pick_tile(B, max(8, tm // 2))
            if new_tm < tm:
                tm = new_tm
                continue
        break
    vmem_limit = int(min(max(32 * 1024 * 1024, 2 * _est(tm, tc)),
                         int(phys_vmem * 0.75)))

    grid = (B // tm, (2 * B) // tc)

    cost = pl.CostEstimate(
        flops=2 * (2 * B) * (2 * B) * Dp,
        transcendentals=(2 * B) * (2 * B) + 6 * B,
        bytes_accessed=(2 * B * Dp * 4                       # row tiles, once
                        + grid[0] * 2 * B * Dp * mm_size     # column restream
                        + 3 * B * 4),
    )

    out1, out2 = pl.pallas_call(
        partial(_infonce_kernel, inv_t=float(1.0 / temperature)),
        out_shape=(jax.ShapeDtypeStruct((B, 1), jnp.float32),
                   jax.ShapeDtypeStruct((B, 1), jnp.float32)),
        grid_spec=pltpu.PrefetchScalarGridSpec(
            num_scalar_prefetch=0,
            grid=grid,
            in_specs=[
                pl.BlockSpec((tm, Dp), lambda i, j: (i, 0)),   # z_i rows (f32, normalized)
                pl.BlockSpec((tm, Dp), lambda i, j: (i, 0)),   # z_j rows (f32, normalized)
                pl.BlockSpec((tc, Dp), lambda i, j: (j, 0)),   # concat cols (mm_dtype)
                pl.BlockSpec((tm, 1), lambda i, j: (i, 0)),    # labels row tile
            ],
            out_specs=[
                pl.BlockSpec((tm, 1), lambda i, j: (i, 0)),    # per-row loss (z_i half)
                pl.BlockSpec((tm, 1), lambda i, j: (i, 0)),    # per-row loss (z_j half)
            ],
            scratch_shapes=[
                pltpu.VMEM((tm, Dp), mm_dtype),    # cached (1/T)-scaled LHS, z_i half
                pltpu.VMEM((tm, Dp), mm_dtype),    # cached (1/T)-scaled LHS, z_j half
                pltpu.VMEM((tm, 1), jnp.float32),  # denominator accumulator, z_i half
                pltpu.VMEM((tm, 1), jnp.float32),  # denominator accumulator, z_j half
                pltpu.VMEM((tm, 1), jnp.float32),  # diag term, z_i half
                pltpu.VMEM((tm, 1), jnp.float32),  # diag term, z_j half
                pltpu.VMEM((tm, 1), jnp.float32),  # positives (labels applied)
            ],
        ),
        compiler_params=pltpu.CompilerParams(
            dimension_semantics=("parallel", "arbitrary"),
            vmem_limit_bytes=vmem_limit,
        ),
        cost_estimate=cost,
    )(zn1, zn2, zcat, labels2d)

    return (jnp.sum(out1) + jnp.sum(out2)) / jnp.float32(2 * B)


def _info_nce_loss_ref(proj_1, proj_2, labels, temperature=0.5):
    """Pure-JAX reference mirroring the PyTorch forward."""
    b = proj_1.shape[0]
    z1 = proj_1 / jnp.maximum(jnp.linalg.norm(proj_1, axis=1, keepdims=True), 1e-12)
    z2 = proj_2 / jnp.maximum(jnp.linalg.norm(proj_2, axis=1, keepdims=True), 1e-12)
    z = jnp.concatenate([z1, z2], axis=0)
    sim = z @ z.T
    mask = 1.0 - jnp.eye(2 * b, dtype=jnp.float32)
    sim_ij = jnp.diagonal(sim, offset=b) * labels
    sim_ji = jnp.diagonal(sim, offset=-b) * labels
    positives = jnp.concatenate([sim_ij, sim_ji], axis=0)
    numerator = jnp.exp(positives / temperature)
    denominator = jnp.sum(mask * jnp.exp(sim / temperature), axis=1)
    all_losses = -jnp.log(numerator / denominator)
    return jnp.sum(all_losses) / (2 * b)


if __name__ == "__main__":
    key = jax.random.PRNGKey(0)
    k1, k2 = jax.random.split(key)
    B, D = 8, 32
    proj_1 = jax.random.normal(k1, (B, D), dtype=jnp.float32)
    proj_2 = jax.random.normal(k2, (B, D), dtype=jnp.float32)
    labels = jnp.ones((B,), dtype=jnp.float32)

    ref = _info_nce_loss_ref(proj_1, proj_2, labels, temperature=0.5)

    # f32 MXU path: tight check.
    loss_f32 = info_nce_loss(proj_1, proj_2, labels, 0.5, use_bf16=False)
    jax.block_until_ready(loss_f32)
    assert jnp.allclose(loss_f32, ref, rtol=1e-3, atol=1e-3), (loss_f32, ref)

    # bf16 MXU path (default, faster): looser check for bf16 operand rounding.
    loss_bf16 = info_nce_loss(proj_1, proj_2, labels, 0.5, use_bf16=True)
    jax.block_until_ready(loss_bf16)
    assert jnp.allclose(loss_bf16, ref, rtol=5e-2, atol=5e-2), (loss_bf16, ref)

    # Multi-tile grid (2 row blocks x 4 column steps): exercises the denominator
    # accumulator, the j==0 prologue caching, and non-trivial labels.
    B2, D2 = 16, 32
    k3, k4 = jax.random.split(k2)
    p1b = jax.random.normal(k3, (B2, D2), dtype=jnp.float32)
    p2b = jax.random.normal(k4, (B2, D2), dtype=jnp.float32)
    lb = jnp.linspace(0.5, 1.5, B2).astype(jnp.float32)
    ref2 = _info_nce_loss_ref(p1b, p2b, lb, temperature=0.5)
    loss2 = info_nce_loss(p1b, p2b, lb, 0.5, use_bf16=False, row_tile=8, col_tile=8)
    jax.block_until_ready(loss2)
    assert jnp.allclose(loss2, ref2, rtol=1e-3, atol=1e-3), (loss2, ref2)

    print("KERNEL_OK")
</pallas_src>

<mosaic_0001>
module attributes {stable_mosaic.version = 11 : i64} {
  func.func @_infonce_kernel(%arg0: i32, %arg1: i32, %arg2: memref<8x128xf32, #tpu.memory_space<vmem>>, %arg3: memref<8x128xf32, #tpu.memory_space<vmem>>, %arg4: memref<16x128xf32, #tpu.memory_space<vmem>>, %arg5: memref<8x1xf32, #tpu.memory_space<vmem>>, %arg6: memref<8x1xf32, #tpu.memory_space<vmem>>, %arg7: memref<8x1xf32, #tpu.memory_space<vmem>>, %arg8: memref<8x128xf32, #tpu.memory_space<vmem>>, %arg9: memref<8x128xf32, #tpu.memory_space<vmem>>, %arg10: memref<8x1xf32, #tpu.memory_space<vmem>>, %arg11: memref<8x1xf32, #tpu.memory_space<vmem>>, %arg12: memref<8x1xf32, #tpu.memory_space<vmem>>, %arg13: memref<8x1xf32, #tpu.memory_space<vmem>>, %arg14: memref<8x1xf32, #tpu.memory_space<vmem>>) attributes {dimension_semantics = [#tpu.dimension_semantics<parallel>, #tpu.dimension_semantics<arbitrary>], iteration_bounds = array<i64: 1, 1>, scalar_prefetch = 0 : i64, scratch_operands = 7 : i64, tpu.core_type = #tpu.core_type<tc>, window_params = [{transform_indices = @transform_0, window_bounds = array<i64: 8, 128>}, {transform_indices = @transform_1, window_bounds = array<i64: 8, 128>}, {transform_indices = @transform_2, window_bounds = array<i64: 16, 128>}, {transform_indices = @transform_3, window_bounds = array<i64: 8, 1>}, {transform_indices = @transform_4, window_bounds = array<i64: 8, 1>}, {transform_indices = @transform_5, window_bounds = array<i64: 8, 1>}]} {
    %c0_i32 = arith.constant 0 : i32
    %0 = arith.cmpi eq, %arg1, %c0_i32 : i32
    %1 = arith.extui %0 : i1 to i32
    %c0_i32_0 = arith.constant 0 : i32
    %2 = arith.cmpi ne, %1, %c0_i32_0 : i32
    scf.if %2 {
      %c0_19 = arith.constant 0 : index
      %c0_20 = arith.constant 0 : index
      %23 = vector.load %arg2[%c0_19, %c0_20] : memref<8x128xf32, #tpu.memory_space<vmem>>, vector<8x128xf32>
      %c0_21 = arith.constant 0 : index
      %c0_22 = arith.constant 0 : index
      %24 = vector.load %arg3[%c0_21, %c0_22] : memref<8x128xf32, #tpu.memory_space<vmem>>, vector<8x128xf32>
      %cst_23 = arith.constant 2.000000e+00 : f32
      %25 = vector.broadcast %cst_23 : f32 to vector<8x128xf32>
      %26 = arith.mulf %23, %25 : vector<8x128xf32>
      %cst_24 = arith.constant 2.000000e+00 : f32
      %27 = vector.broadcast %cst_24 : f32 to vector<8x128xf32>
      %28 = arith.mulf %24, %27 : vector<8x128xf32>
      %c0_25 = arith.constant 0 : index
      %c0_26 = arith.constant 0 : index
      %29 = vector.load %arg8[%c0_25, %c0_26] : memref<8x128xf32, #tpu.memory_space<vmem>>, vector<8x128xf32>
      tpu.vector_store %arg8[%c0_25, %c0_26], %26 {strides = array<i32>} : memref<8x128xf32, #tpu.memory_space<vmem>>, vector<8x128xf32>,
      %c0_27 = arith.constant 0 : index
      %c0_28 = arith.constant 0 : index
      %30 = vector.load %arg9[%c0_27, %c0_28] : memref<8x128xf32, #tpu.memory_space<vmem>>, vector<8x128xf32>
      tpu.vector_store %arg9[%c0_27, %c0_28], %28 {strides = array<i32>} : memref<8x128xf32, #tpu.memory_space<vmem>>, vector<8x128xf32>,
      %31 = arith.mulf %26, %23 : vector<8x128xf32>
      %cst_29 = arith.constant dense<0.000000e+00> : vector<8xf32>
      %32 = vector.multi_reduction <add>, %31, %cst_29 [1] : vector<8x128xf32> to vector<8xf32>
      %33 = vector.shape_cast %32 : vector<8xf32> to vector<8x1xf32>
      %c0_30 = arith.constant 0 : index
      %c0_31 = arith.constant 0 : index
      %34 = vector.load %arg12[%c0_30, %c0_31] : memref<8x1xf32, #tpu.memory_space<vmem>>, vector<8x1xf32>
      tpu.vector_store %arg12[%c0_30, %c0_31], %33 {strides = array<i32>} : memref<8x1xf32, #tpu.memory_space<vmem>>, vector<8x1xf32>,
      %35 = arith.mulf %28, %24 : vector<8x128xf32>
      %cst_32 = arith.constant dense<0.000000e+00> : vector<8xf32>
      %36 = vector.multi_reduction <add>, %35, %cst_32 [1] : vector<8x128xf32> to vector<8xf32>
      %37 = vector.shape_cast %36 : vector<8xf32> to vector<8x1xf32>
      %c0_33 = arith.constant 0 : index
      %c0_34 = arith.constant 0 : index
      %38 = vector.load %arg13[%c0_33, %c0_34] : memref<8x1xf32, #tpu.memory_space<vmem>>, vector<8x1xf32>
      tpu.vector_store %arg13[%c0_33, %c0_34], %37 {strides = array<i32>} : memref<8x1xf32, #tpu.memory_space<vmem>>, vector<8x1xf32>,
      %39 = arith.mulf %23, %24 : vector<8x128xf32>
      %cst_35 = arith.constant dense<0.000000e+00> : vector<8xf32>
      %40 = vector.multi_reduction <add>, %39, %cst_35 [1] : vector<8x128xf32> to vector<8xf32>
      %41 = vector.shape_cast %40 : vector<8xf32> to vector<8x1xf32>
      %c0_36 = arith.constant 0 : index
      %c0_37 = arith.constant 0 : index
      %42 = vector.load %arg5[%c0_36, %c0_37] : memref<8x1xf32, #tpu.memory_space<vmem>>, vector<8x1xf32>
      %43 = arith.mulf %41, %42 : vector<8x1xf32>
      %c0_38 = arith.constant 0 : index
      %c0_39 = arith.constant 0 : index
      %44 = vector.load %arg14[%c0_38, %c0_39] : memref<8x1xf32, #tpu.memory_space<vmem>>, vector<8x1xf32>
      tpu.vector_store %arg14[%c0_38, %c0_39], %43 {strides = array<i32>} : memref<8x1xf32, #tpu.memory_space<vmem>>, vector<8x1xf32>,
      %cst_40 = arith.constant 0.000000e+00 : f32
      %45 = vector.broadcast %cst_40 : f32 to vector<8x1xf32>
      %c0_41 = arith.constant 0 : index
      %c0_42 = arith.constant 0 : index
      %46 = vector.load %arg10[%c0_41, %c0_42] : memref<8x1xf32, #tpu.memory_space<vmem>>, vector<8x1xf32>
      tpu.vector_store %arg10[%c0_41, %c0_42], %45 {strides = array<i32>} : memref<8x1xf32, #tpu.memory_space<vmem>>, vector<8x1xf32>,
      %cst_43 = arith.constant 0.000000e+00 : f32
      %47 = vector.broadcast %cst_43 : f32 to vector<8x1xf32>
      %c0_44 = arith.constant 0 : index
      %c0_45 = arith.constant 0 : index
      %48 = vector.load %arg11[%c0_44, %c0_45] : memref<8x1xf32, #tpu.memory_space<vmem>>, vector<8x1xf32>
      tpu.vector_store %arg11[%c0_44, %c0_45], %47 {strides = array<i32>} : memref<8x1xf32, #tpu.memory_space<vmem>>, vector<8x1xf32>,
    } else {
    }
    %c0 = arith.constant 0 : index
    %c0_1 = arith.constant 0 : index
    %3 = vector.load %arg4[%c0, %c0_1] : memref<16x128xf32, #tpu.memory_space<vmem>>, vector<16x128xf32>
    %c0_2 = arith.constant 0 : index
    %c0_3 = arith.constant 0 : index
    %4 = vector.load %arg8[%c0_2, %c0_3] : memref<8x128xf32, #tpu.memory_space<vmem>>, vector<8x128xf32>
    %cst = arith.constant dense<0.000000e+00> : vector<8x16xf32>
    %5 = tpu.matmul %4, %3, %cst {dimension_numbers = #tpu.dot_dimension_numbers<[1], [1], [0], [0], [0, 0, 1, 0], [], []>} : vector<8x128xf32>, vector<16x128xf32>, vector<8x16xf32> -> vector<8x16xf32>
    %c0_4 = arith.constant 0 : index
    %c0_5 = arith.constant 0 : index
    %6 = vector.load %arg9[%c0_4, %c0_5] : memref<8x128xf32, #tpu.memory_space<vmem>>, vector<8x128xf32>
    %cst_6 = arith.constant dense<0.000000e+00> : vector<8x16xf32>
    %7 = tpu.matmul %6, %3, %cst_6 {dimension_numbers = #tpu.dot_dimension_numbers<[1], [1], [0], [0], [0, 0, 1, 0], [], []>} : vector<8x128xf32>, vector<16x128xf32>, vector<8x16xf32> -> vector<8x16xf32>
    %c0_7 = arith.constant 0 : index
    %c0_8 = arith.constant 0 : index
    %8 = vector.load %arg10[%c0_7, %c0_8] : memref<8x1xf32, #tpu.memory_space<vmem>>, vector<8x1xf32>
    %9 = math.exp %5 : vector<8x16xf32>
    %cst_9 = arith.constant dense<0.000000e+00> : vector<8xf32>
    %10 = vector.multi_reduction <add>, %9, %cst_9 [1] : vector<8x16xf32> to vector<8xf32>
    %11 = vector.shape_cast %10 : vector<8xf32> to vector<8x1xf32>
    %12 = arith.addf %8, %11 : vector<8x1xf32>
    %c0_10 = arith.constant 0 : index
    %c0_11 = arith.constant 0 : index
    %13 = vector.load %arg10[%c0_10, %c0_11] : memref<8x1xf32, #tpu.memory_space<vmem>>, vector<8x1xf32>
    tpu.vector_store %arg10[%c0_10, %c0_11], %12 {strides = array<i32>} : memref<8x1xf32, #tpu.memory_space<vmem>>, vector<8x1xf32>,
    %c0_12 = arith.constant 0 : index
    %c0_13 = arith.constant 0 : index
    %14 = vector.load %arg11[%c0_12, %c0_13] : memref<8x1xf32, #tpu.memory_space<vmem>>, vector<8x1xf32>
    %15 = math.exp %7 : vector<8x16xf32>
    %cst_14 = arith.constant dense<0.000000e+00> : vector<8xf32>
    %16 = vector.multi_reduction <add>, %15, %cst_14 [1] : vector<8x16xf32> to vector<8xf32>
    %17 = vector.shape_cast %16 : vector<8xf32> to vector<8x1xf32>
    %18 = arith.addf %14, %17 : vector<8x1xf32>
    %c0_15 = arith.constant 0 : index
    %c0_16 = arith.constant 0 : index
    %19 = vector.load %arg11[%c0_15, %c0_16] : memref<8x1xf32, #tpu.memory_space<vmem>>, vector<8x1xf32>
    tpu.vector_store %arg11[%c0_15, %c0_16], %18 {strides = array<i32>} : memref<8x1xf32, #tpu.memory_space<vmem>>, vector<8x1xf32>,
    %c0_i32_17 = arith.constant 0 : i32
    %20 = arith.cmpi eq, %arg1, %c0_i32_17 : i32
    %21 = arith.extui %20 : i1 to i32
    %c0_i32_18 = arith.constant 0 : i32
    %22 = arith.cmpi ne, %21, %c0_i32_18 : i32
    scf.if %22 {
      %c0_19 = arith.constant 0 : index
      %c0_20 = arith.constant 0 : index
      %23 = vector.load %arg14[%c0_19, %c0_20] : memref<8x1xf32, #tpu.memory_space<vmem>>, vector<8x1xf32>
      %cst_21 = arith.constant 2.000000e+00 : f32
      %24 = vector.broadcast %cst_21 : f32 to vector<8x1xf32>
      %25 = arith.mulf %23, %24 : vector<8x1xf32>
      %c0_22 = arith.constant 0 : index
      %c0_23 = arith.constant 0 : index
      %26 = vector.load %arg10[%c0_22, %c0_23] : memref<8x1xf32, #tpu.memory_space<vmem>>, vector<8x1xf32>
      %c0_24 = arith.constant 0 : index
      %c0_25 = arith.constant 0 : index
      %27 = vector.load %arg12[%c0_24, %c0_25] : memref<8x1xf32, #tpu.memory_space<vmem>>, vector<8x1xf32>
      %28 = math.exp %27 : vector<8x1xf32>
      %29 = arith.subf %26, %28 : vector<8x1xf32>
      %c0_26 = arith.constant 0 : index
      %c0_27 = arith.constant 0 : index
      %30 = vector.load %arg11[%c0_26, %c0_27] : memref<8x1xf32, #tpu.memory_space<vmem>>, vector<8x1xf32>
      %c0_28 = arith.constant 0 : index
      %c0_29 = arith.constant 0 : index
      %31 = vector.load %arg13[%c0_28, %c0_29] : memref<8x1xf32, #tpu.memory_space<vmem>>, vector<8x1xf32>
      %32 = math.exp %31 : vector<8x1xf32>
      %33 = arith.subf %30, %32 : vector<8x1xf32>
      %34 = math.log %29 : vector<8x1xf32>
      %35 = arith.subf %34, %25 : vector<8x1xf32>
      %c0_30 = arith.constant 0 : index
      %c0_31 = arith.constant 0 : index
      %36 = vector.load %arg6[%c0_30, %c0_31] : memref<8x1xf32, #tpu.memory_space<vmem>>, vector<8x1xf32>
      tpu.vector_store %arg6[%c0_30, %c0_31], %35 {strides = array<i32>} : memref<8x1xf32, #tpu.memory_space<vmem>>, vector<8x1xf32>,
      %37 = math.log %33 : vector<8x1xf32>
      %38 = arith.subf %37, %25 : vector<8x1xf32>
      %c0_32 = arith.constant 0 : index
      %c0_33 = arith.constant 0 : index
      %39 = vector.load %arg7[%c0_32, %c0_33] : memref<8x1xf32, #tpu.memory_space<vmem>>, vector<8x1xf32>
      tpu.vector_store %arg7[%c0_32, %c0_33], %38 {strides = array<i32>} : memref<8x1xf32, #tpu.memory_space<vmem>>, vector<8x1xf32>,
    } else {
    }
    return
  }
  func.func @transform_0(%arg0: i32, %arg1: i32) -> (i32, i32) {
    %c0_i32 = arith.constant 0 : i32
    %c0_i32_0 = arith.constant 0 : i32
    return %arg0, %c0_i32 : i32, i32
  }
  func.func @transform_1(%arg0: i32, %arg1: i32) -> (i32, i32) {
    %c0_i32 = arith.constant 0 : i32
    %c0_i32_0 = arith.constant 0 : i32
    return %arg0, %c0_i32 : i32, i32
  }
  func.func @transform_2(%arg0: i32, %arg1: i32) -> (i32, i32) {
    %c0_i32 = arith.constant 0 : i32
    %c0_i32_0 = arith.constant 0 : i32
    return %arg1, %c0_i32 : i32, i32
  }
  func.func @transform_3(%arg0: i32, %arg1: i32) -> (i32, i32) {
    %c0_i32 = arith.constant 0 : i32
    %c0_i32_0 = arith.constant 0 : i32
    return %arg0, %c0_i32 : i32, i32
  }
  func.func @transform_4(%arg0: i32, %arg1: i32) -> (i32, i32) {
    %c0_i32 = arith.constant 0 : i32
    %c0_i32_0 = arith.constant 0 : i32
    return %arg0, %c0_i32 : i32, i32
  }
  func.func @transform_5(%arg0: i32, %arg1: i32) -> (i32, i32) {
    %c0_i32 = arith.constant 0 : i32
    %c0_i32_0 = arith.constant 0 : i32
    return %arg0, %c0_i32 : i32, i32
  }
}

</mosaic_0001>

<bundles_post_ra>
// kernel: tpu_custom_call.1
= control target key start
LH: loop header
LB: loop body
LE: loop exit
PB: predicated region body
PF: predicated region fallthrough
CT: control target
= control target key end

     0   :  { %11 = vsyncpa [#allocation10], 0  ;;  %s302_s0 = inlined_call_operand.vmem [shape: f32[8,128], index: 0, kind: input, shape index: {}]   ;;  %s303_s1 = inlined_call_operand.hbm [shape: f32[8,128], index: 1, kind: input, shape index: {}]   ;;  %s304_s2 = inlined_call_operand.hbm [shape: f32[16,128], index: 2, kind: input, shape index: {}]   ;;  %s305_s3 = inlined_call_operand.vmem [shape: f32[8,1], index: 3, kind: input, shape index: {}]   ;;  %s306_s4 = inlined_call_operand.vmem [shape: f32[8,1], index: 4, kind: output, shape index: {0}]   ;;  %s307_s5 = inlined_call_operand.vmem [shape: f32[8,1], index: 5, kind: output, shape index: {1}]  }
   0x1   :  { %s20_s20 = sshll.u32 %s303_s1, 4  ;;  %s21_s20 = int_to_ptr.hbm [resolvable:$true] %s20_s20 }
   0x2   :  { %12 = vsyncpa [#allocation12], 0  ;;  %s240_s21 = smov [#allocation9]   ;;  %s30_s25 = sshll.u32 %s304_s2, 4  ;;  %s31_s25 = int_to_ptr.hbm [resolvable:$true] %s30_s25 }
   0x3   :  { %s22_s22 = sshll.u32 %s240_s21, 4  ;;  %s241_s26 = smov [#allocation11]   ;;  %s23_s22 = int_to_ptr.vmem [resolvable:$true] %s22_s22 }
   0x4   :  { %25 = dma.hbm_to_vmem [thread:$0]  %s21_s20, 128, %s23_s22, [#allocation10]  }
   0x5   :  { %s32_s27 = sshll.u32 %s241_s26, 4  ;;  %s242_s28 = smov 128   ;;  %s33_s27 = int_to_ptr.vmem [resolvable:$true] %s32_s27 }
   0x6   :  { %s243_s29 = smov 8  }
   0x7   :  { %38 = dma.hbm_to_vmem [thread:$0]  %s31_s25, 256, %s33_s27, [#allocation12], %s242_s28, %s242_s28, %s243_s29  }
   0x8   :  { %236 = dma.done.wait [#allocation10], 128  }
   0x9   :  { %237 = vsyncadd [#allocation10], 4294967168 }
   0xa   :  { %238 = dma.done.wait [#allocation12], 256  }
   0xb   :  { %239 = vsyncadd [#allocation12], 4294967040  ;;  %v77_v0 = vld [vmem:[#allocation11 + $0x8] sm:$0xff]  ;;  %v53_v1 = vld [vmem:[%s302_s0] sm:$0xff]  ;;  %vm123_vm0 = vcmask 130048   ;;  %vm62_vm1 = vcmask 7168  }
   0xc   :  { %93 = vmatpush.xpose.msra.mxu0 %v77_v0  ;;  %114 = vmatpush.xpose.msra.mxu1 %v77_v0  ;;  %v54_v2 = vld [vmem:[#allocation9] sm:$0xff]  ;;  %v76_v3 = vld [vmem:[#allocation11] sm:$0xff]  ;;  %v55_v4 = vmul.f32 2.0, %v53_v1  ;;  %v244_v17 = vmov 0.0   ;;  %v71_v20 = vld [vmem:[%s305_s3] sm:$0xff] }
   0xd   :  { %v56_v5 = vmul.f32 2.0, %v54_v2  ;;  %v68_v8 = vmul.f32 %v54_v2, %v53_v1  ;;  %74 = vst.msk [vmem:[#allocation4] sm:$0xff] %vm62_vm1, %v244_v17 }
   0xe   :  { %v59_v6 = vmul.f32 %v55_v4, %v53_v1  ;;  %75 = vst.msk [vmem:[#allocation5] sm:$0xff] %vm62_vm1, %v244_v17 }
   0xf   :  { %v64_v7 = vmul.f32 %v56_v5, %v54_v2  ;;  %69 = vadd.xlane.f32.xlu2 %v68_v8 }
  0x10   :  { %94 = vmatpush.xpose.msra.mxu0 %v76_v3  ;;  %115 = vmatpush.xpose.msra.mxu1 %v76_v3 }
  0x11   :  { %60 = vadd.xlane.f32.xlu0 %v59_v6 }
  0x13   :  { %95 = vmatmul.f32.vlgmr.msra.gmra.mxu0 %v55_v4  ;;  %116 = vmatmul.f32.vlgmr.msra.gmra.mxu1 %v56_v5 }
  0x14   :  { %v120_v25 = vld [vmem:[#allocation4] sm:$0xff] }
  0x15   :  { %v130_v30 = vld [vmem:[#allocation5] sm:$0xff] }
  0x19   :  { %65 = vadd.xlane.f32.xlu0 %v64_v7 }
  0x82   :  { %v70_v21 = vpop.xlane.xlu2 %69 }
  0x83   :  { %v72_v22 = vmul.f32 %v71_v20, %v70_v21 }
  0x84   :  { %v61_v18 = vpop.xlane.xlu0 %60 }
  0x85   :  { %63 = vst.msk [vmem:[#allocation6] sm:$0xff] %vm62_vm1, %v61_v18 }
  0x86   :  { %73 = vst.msk [vmem:[#allocation8] sm:$0xff] %vm62_vm1, %v72_v22 }
  0x8c   :  { %v66_v19 = vpop.xlane.xlu0 %65  ;;  %v144_v23 = vld [vmem:[#allocation6] sm:$0xff] }
  0x8d   :  { %67 = vst.msk [vmem:[#allocation7] sm:$0xff] %vm62_vm1, %v66_v19  ;;  %v145_v24 = vmul.f32 1.442695, %v144_v23  ;;  %v141_v36 = vld [vmem:[#allocation8] sm:$0xff] }
  0x8e   :  { %v142_v39 = vmul.f32 2.0, %v141_v36 }
  0x90   :  { %v96_v9 = vpop.f32.mrf.mxu0  ;;  %v117_v10 = vpop.f32.mrf.mxu1 }
  0x91   :  { %v121_v11 = vmul.f32 1.442695, %v96_v9  ;;  %v131_v12 = vmul.f32 1.442695, %v117_v10 }
  0x93   :  { %176 = vpow2.f32 %v121_v11 }
  0x94   :  { %178 = vpow2.f32 %v131_v12  ;;  %v149_v28 = vld [vmem:[#allocation7] sm:$0xff] }
  0x95   :  { %180 = vpow2.f32 %v145_v24  ;;  %v150_v29 = vmul.f32 1.442695, %v149_v28 }
  0x97   :  { %182 = vpow2.f32 %v150_v29 }
  0x99   :  { %v177_v13 = vpop.eup %176 }
  0x9a   :  { %v124_v14 = vsel %vm123_vm0, %v177_v13, 0.0  ;;  %v179_v15 = vpop.eup %178 }
  0x9b   :  { %125 = vadd.xlane.f32.xlu1 %v124_v14  ;;  %v133_v16 = vsel %vm123_vm0, %v179_v15, 0.0  ;;  %v181_v31 = vpop.eup %180 }
  0x9d   :  { %v183_v37 = vpop.eup %182 }
  0xa3   :  { %134 = vadd.xlane.f32.xlu1 %v133_v16 }
 0x10e   :  { %v126_v26 = vpop.xlane.xlu1 %125 }
 0x10f   :  { %v127_v27 = vadd.f32 %v126_v26, %v120_v25 }
 0x111   :  { %129 = vst.msk [vmem:[#allocation4] sm:$0xff] %vm62_vm1, %v127_v27 }
 0x116   :  { %v135_v32 = vpop.xlane.xlu1 %134 }
 0x117   :  { %v136_v33 = vadd.f32 %v135_v32, %v130_v30 }
 0x118   :  { %v143_v34 = vld [vmem:[#allocation4] sm:$0xff] }
 0x119   :  { %v147_v35 = vsub.f32 %v143_v34, %v181_v31  ;;  %137 = vst.msk [vmem:[#allocation5] sm:$0xff] %vm62_vm1, %v136_v33 }
 0x11b   :  { %184 = vlog2.f32 %v147_v35 }
 0x120   :  { %v148_v38 = vld [vmem:[#allocation5] sm:$0xff] }
 0x121   :  { %v185_v40 = vpop.eup %184  ;;  %v152_v41 = vsub.f32 %v148_v38, %v183_v37 }
 0x122   :  { %v154_v42 = vmul.f32 0.6931472, %v185_v40 }
 0x123   :  { %186 = vlog2.f32 %v152_v41 }
 0x124   :  { %v155_v43 = vsub.f32 %v154_v42, %v142_v39 }
 0x126   :  { %156 = vst.msk [vmem:[%s306_s4] sm:$0xff] %vm62_vm1, %v155_v43 }
 0x129   :  { %v187_v44 = vpop.eup %186 }
 0x12a   :  { %v158_v45 = vmul.f32 0.6931472, %v187_v44 }
 0x12c   :  { %v159_v46 = vsub.f32 %v158_v45, %v142_v39 }
 0x12e   :  { %160 = vst.msk [vmem:[%s307_s5] sm:$0xff] %vm62_vm1, %v159_v46 }
 0x12f   :  { %169 = vsyncpa [#allocation10], 1 }
 0x130   :  { %170 = vsyncpa [#allocation12], 1 }

</bundles_post_ra>
